<compile_context>
chip_gen: v6e
topology: v6e:2x2x1
jax: 0.10.0
libtpu: 0.0.40
codegen_flags: <defaults>
</compile_context>

<pallas_src>
import jax
import jax.numpy as jnp
from jax.experimental import pallas as pl
from jax.experimental.pallas import tpu as pltpu

_LANES = 128
_SUBLANES = 8
_MAX_TB = 512  # row-tile size for the batch grid (tiny feature dims -> trivially fits VMEM)


def _round_up(x, m):
    return ((x + m - 1) // m) * m


def mlp_kernel(x_ref, w1_ref, b1_ref, w2_ref, b2_ref, w3_ref, b3_ref, o_ref):
    x = x_ref[...]
    # Read each bias exactly once (hoisted; no repeated implicit broadcasts).
    b1 = b1_ref[...]
    b2 = b2_ref[...]
    b3 = b3_ref[...]

    def sigmoid(v):
        # EUP-friendly sigmoid: tanh runs in the EUP bundle slot, off the 4 VALU slots.
        return 0.5 * (jnp.tanh(0.5 * v) + 1.0)

    h1 = jnp.dot(x, w1_ref[...], preferred_element_type=jnp.float32) + b1
    h1 = sigmoid(h1)
    h2 = jnp.dot(h1, w2_ref[...], preferred_element_type=jnp.float32) + b2
    h2 = sigmoid(h2)
    out = jnp.dot(h2, w3_ref[...], preferred_element_type=jnp.float32) + b3
    o_ref[...] = out.astype(o_ref.dtype)


def mlp_forward(x, params):
    """x: (B, n_input) float32; params: dict with (in,out) weights and (1,out) biases."""
    w1, b1, w2, b2, w3, b3 = (params["w1"], params["b1"], params["w2"],
                              params["b2"], params["w3"], params["b3"])
    B, n_input = x.shape
    n_hidden = w1.shape[1]
    n_output = w3.shape[1]

    # Lane-dense output: pad the output feature dim to a multiple of 128 so stores are unmasked.
    n_out_p = _round_up(n_output, _LANES)
    if n_out_p != n_output:
        w3 = jnp.pad(w3, ((0, 0), (0, n_out_p - n_output)))
        b3 = jnp.pad(b3, ((0, 0), (0, n_out_p - n_output)))

    # Batch tiling: TB is a multiple of 8, at most _MAX_TB; pad B up to a multiple of TB.
    tb = min(_MAX_TB, _round_up(B, _SUBLANES))
    b_p = _round_up(B, tb)
    if b_p != B:
        x = jnp.pad(x, ((0, b_p - B), (0, 0)))
    grid = (b_p // tb,)

    out_padded = pl.pallas_call(
        mlp_kernel,
        out_shape=jax.ShapeDtypeStruct((b_p, n_out_p), jnp.float32),
        grid=grid,
        in_specs=[
            pl.BlockSpec((tb, n_input), lambda i: (i, 0)),          # x: tiled over batch
            pl.BlockSpec((n_input, n_hidden), lambda i: (0, 0)),     # w1: VMEM-resident
            pl.BlockSpec((1, n_hidden), lambda i: (0, 0)),           # b1
            pl.BlockSpec((n_hidden, n_hidden), lambda i: (0, 0)),    # w2
            pl.BlockSpec((1, n_hidden), lambda i: (0, 0)),           # b2
            pl.BlockSpec((n_hidden, n_out_p), lambda i: (0, 0)),     # w3 (lane-padded)
            pl.BlockSpec((1, n_out_p), lambda i: (0, 0)),            # b3 (lane-padded)
        ],
        out_specs=pl.BlockSpec((tb, n_out_p), lambda i: (i, 0)),
        compiler_params=pltpu.CompilerParams(
            dimension_semantics=("parallel",),  # shard batch grid across TCs on v7x
        ),
    )(x, w1, b1, w2, b2, w3, b3)

    return out_padded[:B, :n_output]


def init_params(key, n_input, n_hidden, n_output):
    """Deterministic init mimicking PyTorch Linear default U(-1/sqrt(fan_in), 1/sqrt(fan_in))."""
    ks = jax.random.split(key, 6)

    def lin(kw, kb, fan_in, fan_out):
        bound = 1.0 / jnp.sqrt(fan_in)
        w = jax.random.uniform(kw, (fan_in, fan_out), jnp.float32, -bound, bound)
        b = jax.random.uniform(kb, (1, fan_out), jnp.float32, -bound, bound)
        return w, b

    w1, b1 = lin(ks[0], ks[1], n_input, n_hidden)
    w2, b2 = lin(ks[2], ks[3], n_hidden, n_hidden)
    w3, b3 = lin(ks[4], ks[5], n_hidden, n_output)
    return {"w1": w1, "b1": b1, "w2": w2, "b2": b2, "w3": w3, "b3": b3}


def mlp_reference(x, p):
    h1 = jax.nn.sigmoid(x @ p["w1"] + p["b1"])
    h2 = jax.nn.sigmoid(h1 @ p["w2"] + p["b2"])
    return h2 @ p["w3"] + p["b3"]


if __name__ == "__main__":
    n_input, n_hidden, n_output = 16, 32, 4

    key = jax.random.PRNGKey(0)
    kx, kp, kx2 = jax.random.split(key, 3)
    params = init_params(kp, n_input, n_hidden, n_output)

    # Small test (matches the toy module shapes).
    batch = 8
    x = jax.random.normal(kx, (batch, n_input), jnp.float32)
    out = jax.block_until_ready(mlp_forward(x, params))
    ref = mlp_reference(x, params)
    assert out.shape == (batch, n_output)
    assert jnp.allclose(out, ref, atol=1e-5, rtol=1e-5)

    # Larger, non-multiple batch to exercise the batch grid + padding path.
    batch2 = 1000
    x2 = jax.random.normal(kx2, (batch2, n_input), jnp.float32)
    out2 = jax.block_until_ready(mlp_forward(x2, params))
    ref2 = mlp_reference(x2, params)
    assert out2.shape == (batch2, n_output)
    assert jnp.allclose(out2, ref2, atol=1e-5, rtol=1e-5)

    print("KERNEL_OK")
</pallas_src>

<mosaic_0001>
module attributes {stable_mosaic.version = 11 : i64} {
  func.func @mlp_kernel(%arg0: i32, %arg1: memref<8x16xf32, #tpu.memory_space<vmem>>, %arg2: memref<16x32xf32, #tpu.memory_space<vmem>>, %arg3: memref<1x32xf32, #tpu.memory_space<vmem>>, %arg4: memref<32x32xf32, #tpu.memory_space<vmem>>, %arg5: memref<1x32xf32, #tpu.memory_space<vmem>>, %arg6: memref<32x128xf32, #tpu.memory_space<vmem>>, %arg7: memref<1x128xf32, #tpu.memory_space<vmem>>, %arg8: memref<8x128xf32, #tpu.memory_space<vmem>>) attributes {dimension_semantics = [#tpu.dimension_semantics<parallel>], iteration_bounds = array<i64: 1>, scalar_prefetch = 0 : i64, scratch_operands = 0 : i64, tpu.core_type = #tpu.core_type<tc>, window_params = [{transform_indices = @transform_0, window_bounds = array<i64: 8, 16>}, {pipeline_mode = #tpu.pipeline_mode<synchronous>, transform_indices = @transform_1, window_bounds = array<i64: 16, 32>}, {pipeline_mode = #tpu.pipeline_mode<synchronous>, transform_indices = @transform_2, window_bounds = array<i64: 1, 32>}, {pipeline_mode = #tpu.pipeline_mode<synchronous>, transform_indices = @transform_3, window_bounds = array<i64: 32, 32>}, {pipeline_mode = #tpu.pipeline_mode<synchronous>, transform_indices = @transform_4, window_bounds = array<i64: 1, 32>}, {pipeline_mode = #tpu.pipeline_mode<synchronous>, transform_indices = @transform_5, window_bounds = array<i64: 32, 128>}, {pipeline_mode = #tpu.pipeline_mode<synchronous>, transform_indices = @transform_6, window_bounds = array<i64: 1, 128>}, {transform_indices = @transform_7, window_bounds = array<i64: 8, 128>}]} {
    %c0 = arith.constant 0 : index
    %c0_0 = arith.constant 0 : index
    %0 = vector.load %arg1[%c0, %c0_0] : memref<8x16xf32, #tpu.memory_space<vmem>>, vector<8x16xf32>
    %c0_1 = arith.constant 0 : index
    %c0_2 = arith.constant 0 : index
    %1 = vector.load %arg3[%c0_1, %c0_2] : memref<1x32xf32, #tpu.memory_space<vmem>>, vector<1x32xf32>
    %c0_3 = arith.constant 0 : index
    %c0_4 = arith.constant 0 : index
    %2 = vector.load %arg5[%c0_3, %c0_4] : memref<1x32xf32, #tpu.memory_space<vmem>>, vector<1x32xf32>
    %c0_5 = arith.constant 0 : index
    %c0_6 = arith.constant 0 : index
    %3 = vector.load %arg7[%c0_5, %c0_6] : memref<1x128xf32, #tpu.memory_space<vmem>>, vector<1x128xf32>
    %c0_7 = arith.constant 0 : index
    %c0_8 = arith.constant 0 : index
    %4 = vector.load %arg2[%c0_7, %c0_8] : memref<16x32xf32, #tpu.memory_space<vmem>>, vector<16x32xf32>
    %cst = arith.constant dense<0.000000e+00> : vector<8x32xf32>
    %5 = tpu.matmul %0, %4, %cst {dimension_numbers = #tpu.dot_dimension_numbers<[1], [0], [0], [1], [0, 0, 1, 1], [], []>} : vector<8x16xf32>, vector<16x32xf32>, vector<8x32xf32> -> vector<8x32xf32>
    %6 = vector.broadcast %1 : vector<1x32xf32> to vector<8x32xf32>
    %7 = arith.addf %5, %6 : vector<8x32xf32>
    %cst_9 = arith.constant 5.000000e-01 : f32
    %8 = vector.broadcast %cst_9 : f32 to vector<8x32xf32>
    %9 = arith.mulf %8, %7 : vector<8x32xf32>
    %10 = math.tanh %9 : vector<8x32xf32>
    %cst_10 = arith.constant 1.000000e+00 : f32
    %11 = vector.broadcast %cst_10 : f32 to vector<8x32xf32>
    %12 = arith.addf %10, %11 : vector<8x32xf32>
    %cst_11 = arith.constant 5.000000e-01 : f32
    %13 = vector.broadcast %cst_11 : f32 to vector<8x32xf32>
    %14 = arith.mulf %13, %12 : vector<8x32xf32>
    %c0_12 = arith.constant 0 : index
    %c0_13 = arith.constant 0 : index
    %15 = vector.load %arg4[%c0_12, %c0_13] : memref<32x32xf32, #tpu.memory_space<vmem>>, vector<32x32xf32>
    %cst_14 = arith.constant dense<0.000000e+00> : vector<8x32xf32>
    %16 = tpu.matmul %14, %15, %cst_14 {dimension_numbers = #tpu.dot_dimension_numbers<[1], [0], [0], [1], [0, 0, 1, 1], [], []>} : vector<8x32xf32>, vector<32x32xf32>, vector<8x32xf32> -> vector<8x32xf32>
    %17 = vector.broadcast %2 : vector<1x32xf32> to vector<8x32xf32>
    %18 = arith.addf %16, %17 : vector<8x32xf32>
    %cst_15 = arith.constant 5.000000e-01 : f32
    %19 = vector.broadcast %cst_15 : f32 to vector<8x32xf32>
    %20 = arith.mulf %19, %18 : vector<8x32xf32>
    %21 = math.tanh %20 : vector<8x32xf32>
    %cst_16 = arith.constant 1.000000e+00 : f32
    %22 = vector.broadcast %cst_16 : f32 to vector<8x32xf32>
    %23 = arith.addf %21, %22 : vector<8x32xf32>
    %cst_17 = arith.constant 5.000000e-01 : f32
    %24 = vector.broadcast %cst_17 : f32 to vector<8x32xf32>
    %25 = arith.mulf %24, %23 : vector<8x32xf32>
    %c0_18 = arith.constant 0 : index
    %c0_19 = arith.constant 0 : index
    %26 = vector.load %arg6[%c0_18, %c0_19] : memref<32x128xf32, #tpu.memory_space<vmem>>, vector<32x128xf32>
    %cst_20 = arith.constant dense<0.000000e+00> : vector<8x128xf32>
    %27 = tpu.matmul %25, %26, %cst_20 {dimension_numbers = #tpu.dot_dimension_numbers<[1], [0], [0], [1], [0, 0, 1, 1], [], []>} : vector<8x32xf32>, vector<32x128xf32>, vector<8x128xf32> -> vector<8x128xf32>
    %28 = vector.broadcast %3 : vector<1x128xf32> to vector<8x128xf32>
    %29 = arith.addf %27, %28 : vector<8x128xf32>
    %c0_21 = arith.constant 0 : index
    %c0_22 = arith.constant 0 : index
    %30 = vector.load %arg8[%c0_21, %c0_22] : memref<8x128xf32, #tpu.memory_space<vmem>>, vector<8x128xf32>
    tpu.vector_store %arg8[%c0_21, %c0_22], %29 {strides = array<i32>} : memref<8x128xf32, #tpu.memory_space<vmem>>, vector<8x128xf32>,
    return
  }
  func.func @transform_0(%arg0: i32) -> (i32, i32) {
    %c0_i32 = arith.constant 0 : i32
    %c0_i32_0 = arith.constant 0 : i32
    return %arg0, %c0_i32 : i32, i32
  }
  func.func @transform_1(%arg0: i32) -> (i32, i32) {
    %c0_i32 = arith.constant 0 : i32
    %c0_i32_0 = arith.constant 0 : i32
    %c0_i32_1 = arith.constant 0 : i32
    return %c0_i32, %c0_i32_0 : i32, i32
  }
  func.func @transform_2(%arg0: i32) -> (i32, i32) {
    %c0_i32 = arith.constant 0 : i32
    %c0_i32_0 = arith.constant 0 : i32
    %c0_i32_1 = arith.constant 0 : i32
    return %c0_i32, %c0_i32_0 : i32, i32
  }
  func.func @transform_3(%arg0: i32) -> (i32, i32) {
    %c0_i32 = arith.constant 0 : i32
    %c0_i32_0 = arith.constant 0 : i32
    %c0_i32_1 = arith.constant 0 : i32
    return %c0_i32, %c0_i32_0 : i32, i32
  }
  func.func @transform_4(%arg0: i32) -> (i32, i32) {
    %c0_i32 = arith.constant 0 : i32
    %c0_i32_0 = arith.constant 0 : i32
    %c0_i32_1 = arith.constant 0 : i32
    return %c0_i32, %c0_i32_0 : i32, i32
  }
  func.func @transform_5(%arg0: i32) -> (i32, i32) {
    %c0_i32 = arith.constant 0 : i32
    %c0_i32_0 = arith.constant 0 : i32
    %c0_i32_1 = arith.constant 0 : i32
    return %c0_i32, %c0_i32_0 : i32, i32
  }
  func.func @transform_6(%arg0: i32) -> (i32, i32) {
    %c0_i32 = arith.constant 0 : i32
    %c0_i32_0 = arith.constant 0 : i32
    %c0_i32_1 = arith.constant 0 : i32
    return %c0_i32, %c0_i32_0 : i32, i32
  }
  func.func @transform_7(%arg0: i32) -> (i32, i32) {
    %c0_i32 = arith.constant 0 : i32
    %c0_i32_0 = arith.constant 0 : i32
    return %arg0, %c0_i32 : i32, i32
  }
}

</mosaic_0001>

<bundles_post_ra>
// kernel: tpu_custom_call.1
= control target key start
LH: loop header
LB: loop body
LE: loop exit
PB: predicated region body
PF: predicated region fallthrough
CT: control target
= control target key end

     0   :  { %12 = vsyncpa [#allocation3], 0  ;;  %s612_s0 = inlined_call_operand.hbm [shape: f32[8,16], index: 0, kind: input, shape index: {}]   ;;  %s613_s1 = inlined_call_operand.hbm [shape: f32[16,32], index: 1, kind: input, shape index: {}]   ;;  %s614_s2 = inlined_call_operand.vmem [shape: f32[1,32], index: 2, kind: input, shape index: {}]   ;;  %s615_s3 = inlined_call_operand.hbm [shape: f32[32,32], index: 3, kind: input, shape index: {}]   ;;  %s616_s4 = inlined_call_operand.vmem [shape: f32[1,32], index: 4, kind: input, shape index: {}]   ;;  %s617_s5 = inlined_call_operand.hbm [shape: f32[32,128], index: 5, kind: input, shape index: {}]   ;;  %s618_s6 = inlined_call_operand.vmem [shape: f32[1,128], index: 6, kind: input, shape index: {}]   ;;  %s619_s7 = inlined_call_operand.hbm [shape: f32[8,128], index: 7, kind: output, shape index: {}]  }
   0x1   :  { %13 = vsyncpa [#allocation6], 0 }
   0x2   :  { %14 = vsyncpa [#allocation9], 0 }
   0x3   :  { %15 = vsyncpa [#allocation4], 0  ;;  %s528_s24 = smov [#allocation5]  }
   0x4   :  { %s31_s25 = sshll.u32 %s528_s24, 4  ;;  %s32_s25 = int_to_ptr.vmem [resolvable:$true] %s31_s25 }
   0x5   :  { %s428_s26 = scalar_lea.vmem %s32_s25, 256  ;;  %p433_p1 = scmp.lt.s32.totalorder %s32_s25, %s32_s25 }
   0x6   :  { %p429_p0 = scmp.ne.s32.totalorder %s32_s25, %s428_s26  ;;  %p434_p2 = scmp.lt.s32.totalorder %s428_s26, %s428_s26 }
   0x8   :  { %p435_p3 = por %p434_p2, %p433_p1 }
   0xa   :  { %p436_p4 = pnand %p435_p3, %p429_p0 }
   0xc   :  { %439 = shalt.err (!%p436_p4)
}
   0xd   :  { %s529_s27 = smov 128   ;;  %s530_s28 = smov 8  }
   0xe   :  { %37 = dma.hbm_to_vmem [thread:$0]  %s613_s1, 256, %s32_s25, [#allocation6], %s529_s27, %s529_s27, %s530_s28  }
   0xf   :  { %s531_s8 = smov [#allocation2]   ;;  %s532_s10 = smov [#allocation7]  }
  0x10   :  { %s22_s9 = sshll.u32 %s531_s8, 4  ;;  %s45_s11 = sshll.u32 %s532_s10, 4  ;;  %s23_s9 = int_to_ptr.vmem [resolvable:$true] %s22_s9  ;;  %s46_s11 = int_to_ptr.vmem [resolvable:$true] %s45_s11 }
  0x11   :  { %s448_s12 = scalar_lea.vmem %s23_s9, 128  ;;  %p453_p6 = scmp.lt.s32.totalorder %s23_s9, %s23_s9 }
  0x12   :  { %p449_p5 = scmp.ne.s32.totalorder %s23_s9, %s448_s12  ;;  %p454_p7 = scmp.lt.s32.totalorder %s448_s12, %s448_s12 }
  0x14   :  { %p455_p8 = por %p454_p7, %p453_p6 }
  0x16   :  { %p456_p9 = pnand %p455_p8, %p449_p5 }
  0x18   :  { %459 = shalt.err (!%p456_p9)
}
  0x19   :  { %25 = dma.hbm_to_vmem [thread:$0]  %s612_s0, 128, %s23_s9, [#allocation3]  }
  0x1a   :  { %s468_s15 = scalar_lea.vmem %s46_s11, 512  ;;  %p473_p11 = scmp.lt.s32.totalorder %s46_s11, %s46_s11 }
  0x1b   :  { %p469_p10 = scmp.ne.s32.totalorder %s46_s11, %s468_s15  ;;  %p474_p12 = scmp.lt.s32.totalorder %s468_s15, %s468_s15 }
  0x1d   :  { %p475_p13 = por %p474_p12, %p473_p11 }
  0x1f   :  { %p476_p0 = pnand %p475_p13, %p469_p10 }
  0x21   :  { %479 = shalt.err (!%p476_p0)
}
  0x22   :  { %51 = dma.hbm_to_vmem [thread:$0]  %s615_s3, 512, %s46_s11, [#allocation6], %s529_s27, %s529_s27, %s530_s28  }
  0x23   :  { %s533_s17 = smov [#allocation8]  }
  0x24   :  { %s59_s18 = sshll.u32 %s533_s17, 4  ;;  %s60_s18 = int_to_ptr.vmem [resolvable:$true] %s59_s18 }
  0x25   :  { %s488_s19 = scalar_lea.vmem %s60_s18, 512  ;;  %p493_p2 = scmp.lt.s32.totalorder %s60_s18, %s60_s18 }
  0x26   :  { %p489_p1 = scmp.ne.s32.totalorder %s60_s18, %s488_s19  ;;  %p494_p3 = scmp.lt.s32.totalorder %s488_s19, %s488_s19 }
  0x28   :  { %p495_p4 = por %p494_p3, %p493_p2 }
  0x2a   :  { %p496_p5 = pnand %p495_p4, %p489_p1 }
  0x2c   :  { %499 = shalt.err (!%p496_p5)
}
  0x2d   :  { %65 = dma.hbm_to_vmem [thread:$0]  %s617_s5, 512, %s60_s18, [#allocation9], %s529_s27, %s529_s27, %s530_s28  }
  0x2e   :  { %520 = dma.done.wait [#allocation3], 128  }
  0x2f   :  { %521 = vsyncadd [#allocation3], 4294967168 }
  0x30   :  { %522 = dma.done.wait [#allocation6], 768  }
  0x31   :  { %523 = vsyncadd [#allocation6], 4294966528 }
  0x32   :  { %524 = dma.done.wait [#allocation9], 512  }
  0x33   :  { %525 = vsyncadd [#allocation9], 4294966784  ;;  %v534_v0 = vmov 0.0   ;;  %vm535_vm0 = vmmov 0   ;;  %v85_v1 = vld [vmem:[#allocation5 + $0x8] sm:$0xff]  ;;  %v84_v2 = vld [vmem:[#allocation5] sm:$0xff] }
  0x34   :  { %378 = vmatprep.subr.mxu0 %v534_v0  ;;  %382 = vmatprep.mubr.msk.f32.mxu0 %vm535_vm0, %v534_v0  ;;  %v80_v3 = vld [vmem:[#allocation2] sm:$0xff]  ;;  %vm92_vm1 = vcmask 130048   ;;  %v173_v4 = vld [vmem:[#allocation7 + $0x18] sm:$0xff]  ;;  %v172_v5 = vld [vmem:[#allocation7 + $0x10] sm:$0xff]  ;;  %vm180_vm2 = vcmask 261120   ;;  %s536_s24 = smov [#allocation10]  }
  0x35   :  { %385 = vmatprep.subr.mxu1 %v534_v0  ;;  %393 = vmatprep.mubr.msk.f32.mxu1 %vm535_vm0, %v534_v0  ;;  %v171_v6 = vld [vmem:[#allocation7 + $0x8] sm:$0xff]  ;;  %v170_v7 = vld [vmem:[#allocation7] sm:$0xff]  ;;  %v261_v16 = vld [vmem:[#allocation8 + $0x18] sm:$0xff]  ;;  %s348_s25 = sshll.u32 %s536_s24, 4  ;;  %s349_s25 = int_to_ptr.vmem [resolvable:$true] %s348_s25 }
  0x36   :  { %379 = vmatpush3.msra.mxu0 %v85_v1  ;;  %386 = vmatpush3.msra.mxu1 %v173_v4  ;;  %v359_v8 = vld [vmem:[%s614_s2] ss:$0 sm:$0xff]  ;;  %v260_v17 = vld [vmem:[#allocation8 + $0x10] sm:$0xff]  ;;  %v258_v19 = vld [vmem:[#allocation8] sm:$0xff]  ;;  %p505_p7 = scmp.lt.s32.totalorder %s349_s25, %s349_s25 }
  0x37   :  { %380 = vmatprep.subr.mxu0 %v534_v0  ;;  %387 = vmatprep.subr.mxu1 %v534_v0  ;;  %v259_v18 = vld [vmem:[#allocation8 + $0x8] sm:$0xff] }
  0x38   :  { %381 = vmatpush3.msra.mxu0 %v84_v2  ;;  %388 = vmatpush3.msra.mxu1 %v172_v5  ;;  %v361_v20 = vld [vmem:[%s616_s4] ss:$0 sm:$0xff]  ;;  %s500_s4 = scalar_lea.vmem %s349_s25, 128 }
  0x39   :  { %383 = vmatmul.mubr.msk.f32.vlgmr.msra.gmra.mxu0 %vm92_vm1, %v80_v3  ;;  %396 = vmatprep.subr.mxu0 %v534_v0  ;;  %v363_v28 = vld [vmem:[%s618_s6] ss:$0 sm:$0xff]  ;;  %p501_p6 = scmp.ne.s32.totalorder %s349_s25, %s500_s4  ;;  %p506_p8 = scmp.lt.s32.totalorder %s500_s4, %s500_s4 }
  0x3a   :  { %404 = vmatprep.mubr.msk.f32.mxu0 %vm535_vm0, %v534_v0  ;;  %389 = vmatprep.subr.mxu1 %v534_v0 }
  0x3b   :  { %390 = vmatpush3.msra.mxu1 %v171_v6  ;;  %397 = vmatpush3.msra.mxu0 %v261_v16  ;;  %p507_p9 = por %p506_p8, %p505_p7 }
  0x3c   :  { %391 = vmatprep.subr.mxu1 %v534_v0  ;;  %398 = vmatprep.subr.mxu0 %v534_v0 }
  0x3d   :  { %392 = vmatpush3.msra.mxu1 %v170_v7  ;;  %399 = vmatpush3.msra.mxu0 %v260_v17  ;;  %p508_p10 = pnand %p507_p9, %p501_p6 }
  0x3e   :  { %400 = vmatprep.subr.mxu0 %v534_v0 }
  0x3f   :  { %401 = vmatpush3.msra.mxu0 %v259_v18 }
  0x40   :  { %402 = vmatprep.subr.mxu0 %v534_v0 }
  0x41   :  { %403 = vmatpush3.msra.mxu0 %v258_v19 }
  0xf9   :  { %v162_v9 = vpop.f32.mrf.mxu0 }
  0xfa   :  { %v163_v10 = vadd.f32 %v359_v8, %v162_v9 }
  0xfb   :  { %v384_v11 = vpop.f32.mrf.mxu0 }
  0xfc   :  { %v166_v12 = vmul.f32 0.5, %v163_v10 }
  0xfe   :  { %416 = vtanh.f32 %v166_v12 }
 0x10b   :  { %v417_v13 = vpop.eup %416 }
 0x10c   :  { %v168_v14 = vadd.f32 1.0, %v417_v13 }
 0x10e   :  { %v169_v15 = vmul.f32 0.5, %v168_v14 }
 0x110   :  { %394 = vmatmul.mubr.msk.f32.vlgmr.msra.gmra.mxu1 %vm180_vm2, %v169_v15 }
 0x1d0   :  { %v250_v21 = vpop.f32.mrf.mxu1 }
 0x1d1   :  { %v251_v22 = vadd.f32 %v361_v20, %v250_v21 }
 0x1d2   :  { %v395_v23 = vpop.f32.mrf.mxu1 }
 0x1d3   :  { %v254_v24 = vmul.f32 0.5, %v251_v22 }
 0x1d5   :  { %418 = vtanh.f32 %v254_v24 }
 0x1e2   :  { %v419_v25 = vpop.eup %418 }
 0x1e3   :  { %v256_v26 = vadd.f32 1.0, %v419_v25 }
 0x1e5   :  { %v257_v27 = vmul.f32 0.5, %v256_v26 }
 0x1e7   :  { %405 = vmatmul.mubr.msk.f32.vlgmr.msra.gmra.mxu0 %vm180_vm2, %v257_v27 }
 0x2a7   :  { %v337_v29 = vpop.f32.mrf.mxu0 }
 0x2a8   :  { %v338_v30 = vadd.f32 %v363_v28, %v337_v29 }
 0x2a9   :  { %v406_v31 = vpop.f32.mrf.mxu0 }
 0x2aa   :  { %341 = vst [vmem:[#allocation10] sm:$0xff] %v338_v30 }
 0x2ab   :  { %511 = shalt.err (!%p508_p10)
}
 0x2ac   :  { %351 = dma.vmem_to_hbm [thread:$0]  %s349_s25, 128, %s619_s7, [#allocation4]  }
 0x2ad   :  { %526 = dma.done.wait [#allocation4], 128  }
 0x2ae   :  { %527 = vsyncadd [#allocation4], 4294967168 }
 0x2af   :  { %355 = vsyncpa [#allocation3], 1 }
 0x2b0   :  { %356 = vsyncpa [#allocation6], 1 }
 0x2b1   :  { %357 = vsyncpa [#allocation9], 1 }
 0x2b2   :  { %358 = vsyncpa [#allocation4], 1 }

</bundles_post_ra>
